<compile_context>
chip_gen: v6e
topology: v6e:2x2x1
jax: 0.10.0
libtpu: 0.0.40
codegen_flags: <defaults>
</compile_context>

<pallas_src>
import numpy as np
import jax
import jax.numpy as jnp
from jax.experimental import pallas as pl
from jax.experimental.pallas import tpu as pltpu

ALPHA = 0.2                      # lrelu_agc(alpha=0.2, gain=sqrt_2, clamp=256)
GAIN = float(np.sqrt(2.0))
CLAMP = 256.0


def _round_up(x, m):
    return (x + m - 1) // m * m


# ------------------------- roll-convention probe --------------------------- #
_ROLL_TO_HIGHER = None


def _roll_shifts_to_higher():
    """One-time probe: True if pltpu.roll matches np.roll (element i -> i+shift)."""
    global _ROLL_TO_HIGHER
    if _ROLL_TO_HIGHER is None:
        def k(x_ref, o_ref):
            o_ref[...] = pltpu.roll(x_ref[...], 1, axis=1)

        x = jnp.tile(jnp.arange(128, dtype=jnp.float32)[None, :], (8, 1))
        vmem = pl.BlockSpec(memory_space=pltpu.MemorySpace.VMEM)
        y = pl.pallas_call(k, out_shape=jax.ShapeDtypeStruct((8, 128), jnp.float32),
                           in_specs=[vmem], out_specs=vmem)(x)
        _ROLL_TO_HIGHER = bool(np.asarray(y)[0, 0] == 127.0)
    return _ROLL_TO_HIGHER


# ----------------------------- in-kernel helpers --------------------------- #
def _lrelu_agc(y):
    y = jnp.where(y >= 0.0, y, y * ALPHA) * GAIN
    return jnp.clip(y, -CLAMP, CLAMP)


def _tap_stack(x, *, ks, pad, H, W, apply_mask, roll_hi):
    """Stack ks*ks shifted (+masked) copies of x into one (ks*ks*cin, M) array.

    x: (cin, M) f32, lanes ordered (b, h, w), M a multiple of 128 (>= B*H*W;
    extra lanes are don't-care).  Row block tap = di*ks+dj holds x shifted so
    lane m carries x[:, m + (di-pad)*W + (dj-pad)], zeroed where the tap falls
    outside the HxW image (wrapped lanes are exactly the zeroed ones).
    """
    cin, M = x.shape
    if apply_mask:
        ids = jax.lax.broadcasted_iota(jnp.int32, (1, M), 1)
        hh = (ids // W) % H
        ww = ids % W
    pieces = []
    for di in range(ks):
        for dj in range(ks):
            dh, dw = di - pad, dj - pad
            t = dh * W + dw
            if t == 0:
                rolled = x
            else:
                shift = (-t) % M if roll_hi else t % M
                rolled = pltpu.roll(x, shift, axis=1)
            if apply_mask:
                lo_h, hi_h = max(0, -dh), min(H, H - dh)
                lo_w, hi_w = max(0, -dw), min(W, W - dw)
                if (lo_h, hi_h, lo_w, hi_w) != (0, H, 0, W):
                    valid = ((hh >= lo_h) & (hh < hi_h) &
                             (ww >= lo_w) & (ww < hi_w))
                    rolled = rolled * valid.astype(rolled.dtype)
            pieces.append(rolled)
    return jnp.concatenate(pieces, axis=0)


def _conv2d(x, w, *, ks, pad, H, W, roll_hi):
    """Stride-1 'same'(pad) conv = ONE MXU matmul over the tap-stacked operand."""
    stacked = _tap_stack(x, ks=ks, pad=pad, H=H, W=W, apply_mask=True, roll_hi=roll_hi)
    return jnp.dot(w, stacked.astype(jnp.bfloat16), preferred_element_type=jnp.float32)


def _down_select_mat(B, H, W, n_rows, n_cols):
    """In-kernel 0/1 bf16 (n_rows, n_cols) matrix picking the even (h, w) pixels."""
    Ho, Wo = H // 2, W // 2
    m_idx = jax.lax.broadcasted_iota(jnp.int32, (n_rows, n_cols), 0)
    mo_idx = jax.lax.broadcasted_iota(jnp.int32, (n_rows, n_cols), 1)
    b_o = mo_idx // (Ho * Wo)
    rem = mo_idx - b_o * (Ho * Wo)
    ho = rem // Wo
    wo = rem - ho * Wo
    src = b_o * (H * W) + (2 * ho) * W + 2 * wo
    return (m_idx == src).astype(jnp.bfloat16)


def _fc_select_mat(B, n_rows):
    """In-kernel 0/1 bf16 (n_rows, B) matrix picking lane b*16 (pos (0,0) of sample b)."""
    m_idx = jax.lax.broadcasted_iota(jnp.int32, (n_rows, B), 0)
    b_idx = jax.lax.broadcasted_iota(jnp.int32, (n_rows, B), 1)
    return (m_idx == b_idx * 16).astype(jnp.bfloat16)


# ----------------------- parameter initialization -------------------------- #
def _to_kernel_layout(w_oihw):
    # torch (O, C, kh, kw) -> (O, kh*kw*C) bf16, columns tap-major then input channel.
    O, C, kh, kw = w_oihw.shape
    return jnp.transpose(w_oihw, (0, 2, 3, 1)).reshape(O, kh * kw * C).astype(jnp.bfloat16)


def _compose_blur(w_oihw, f2d):
    # Full 2-D convolution of each 3x3 tap kernel with the 4x4 blur filter -> 6x6;
    # equivalent to blur(pad=2) followed by the 3x3 conv (both cross-correlations).
    O, C, kh, kw = w_oihw.shape
    fh, fw = f2d.shape
    out = jnp.zeros((O, C, kh + fh - 1, kw + fw - 1), jnp.float32)
    for i in range(kh):
        for j in range(kw):
            out = out.at[:, :, i:i + fh, j:j + fw].add(
                w_oihw[:, :, i, j][..., None, None] * f2d)
    return out


def init_encoder_params(key, resolution=16, ic_n=4, oc_n=64, ch_base=128, ch_max=32,
                        resample_filter=(1, 3, 3, 1)):
    """Returns (params, raw): kernel-ready layouts plus original-layout f32 weights."""
    log2res = int(np.log2(resolution))
    assert 2 ** log2res == resolution
    encode_res = [2 ** i for i in range(log2res, 1, -1)]        # e.g. [16, 8, 4]
    f1 = np.asarray(resample_filter, np.float32)
    f2d_np = np.outer(f1, f1)
    f2d = jnp.asarray(f2d_np / f2d_np.sum(), jnp.float32)

    keys = list(jax.random.split(key, 4 * len(encode_res) + 4))
    kpos = [0]

    def nkey():
        k = keys[kpos[0]]
        kpos[0] += 1
        return k

    def conv_w(ic, oc, ks):
        w = jax.random.normal(nkey(), (oc, ic, ks, ks), jnp.float32)
        return w * (1.0 / np.sqrt(ic * ks * ks))                # equalized-lr gain folded in

    def bias(oc):
        return jax.random.normal(nkey(), (oc,), jnp.float32) * 0.1

    params = {'encode_res': encode_res, 'blocks': [], 'ic_n': ic_n, 'oc_n': oc_n}
    raw = {'blocks': [], 'resample_filter': resample_filter}
    bias_list = []

    for idx, (resi, resj) in enumerate(zip(encode_res[:-1], encode_res[1:])):
        ci = min(ch_base // resi, ch_max)
        cj = min(ch_base // resj, ch_max)
        blk = {'res': resi, 'ci': ci, 'cj': cj}
        rblk = {'res': resi}
        if idx == 0:                                            # fromrgb only on first block
            w, b = conv_w(ic_n, ci, 1), bias(ci)
            rblk['fromrgb_w'], rblk['fromrgb_b'] = w, b
            blk['fromrgb_w'] = _to_kernel_layout(w)
            bias_list.append(b)
        w, b = conv_w(ci, ci, 3), bias(ci)
        rblk['conv0_w'], rblk['conv0_b'] = w, b
        blk['conv0_w'] = _to_kernel_layout(w)
        bias_list.append(b)
        w, b = conv_w(ci, cj, 3), bias(cj)                      # down-sampling conv
        rblk['conv1_w'], rblk['conv1_b'] = w, b
        blk['conv1_w'] = _to_kernel_layout(_compose_blur(w, f2d))
        bias_list.append(b)
        params['blocks'].append(blk)
        raw['blocks'].append(rblk)

    c4 = min(ch_base // encode_res[-1], ch_max)
    w, b = conv_w(c4, c4, 3), bias(c4)
    fcw = jax.random.normal(nkey(), (oc_n, c4, 4, 4), jnp.float32) * (1.0 / np.sqrt(c4 * 16))
    fcb = bias(oc_n)
    params['b4'] = {'c': c4, 'oc': oc_n,
                    'conv_w': _to_kernel_layout(w), 'fc_w': _to_kernel_layout(fcw)}
    raw['b4'] = {'conv_w': w, 'conv_b': b, 'fc_w': fcw, 'fc_b': fcb}
    bias_list += [b, fcb]

    # Pack all biases into one (cmax, n_bias) f32 slab (column j = layer j's bias).
    cmax = _round_up(max(bb.shape[0] for bb in bias_list), 8)
    slab = jnp.zeros((cmax, len(bias_list)), jnp.float32)
    for j, bb in enumerate(bias_list):
        slab = slab.at[:bb.shape[0], j].set(bb)
    params['bias_slab'] = slab
    return params, raw


# ------------------------------- forward ----------------------------------- #
def encoder_forward(params, img_nchw):
    """Whole encoder in one fused Pallas kernel.

    img_nchw: (B, ic_n, R, R) -> (x (B, oc_n), feats {res: (B, C_res, res, res)})
    """
    B, cin0, H0, W0 = img_nchw.shape
    encode_res = params['encode_res']
    assert H0 == W0 == encode_res[0]
    blocks, b4 = params['blocks'], params['b4']
    c4, oc = b4['c'], b4['oc']
    roll_hi = _roll_shifts_to_higher()

    # Flatten image to (C, B*H*W) bf16 (lane-dense spatial axis), padded to 128 lanes.
    M0_real = B * H0 * W0
    M0 = _round_up(M0_real, 128)
    img_flat = jnp.transpose(img_nchw.astype(jnp.float32), (1, 0, 2, 3)).reshape(cin0, M0_real)
    if M0 != M0_real:
        img_flat = jnp.pad(img_flat, ((0, 0), (0, M0 - M0_real)))
    img_flat = img_flat.astype(jnp.bfloat16)

    inputs = [img_flat, params['bias_slab']]
    meta = []
    for blk in blocks:
        res, ci, cj = blk['res'], blk['ci'], blk['cj']
        meta.append({'res': res, 'ci': ci, 'cj': cj,
                     'Mreal': B * res * res,
                     'Mp_next': _round_up(B * (res // 2) ** 2, 128),
                     'has_rgb': 'fromrgb_w' in blk})
        if 'fromrgb_w' in blk:
            inputs.append(blk['fromrgb_w'])
        inputs += [blk['conv0_w'], blk['conv1_w']]
    inputs += [b4['conv_w'], b4['fc_w']]
    M4_real = B * 16
    n_in = len(inputs)

    out_shapes = [jax.ShapeDtypeStruct((oc, B), jnp.float32)]
    out_shapes += [jax.ShapeDtypeStruct((m['ci'], m['Mreal']), jnp.float32) for m in meta]
    out_shapes += [jax.ShapeDtypeStruct((c4, M4_real), jnp.float32)]

    def kernel(*refs):
        in_refs, out_refs = refs[:n_in], refs[n_in:]
        img = in_refs[0][...]                          # (ic_n, M0) bf16
        biases = in_refs[1][...]                       # (cmax, n_bias) f32
        widx, bcol = 2, 0
        x = None
        for bi, mt in enumerate(meta):
            res, ci, cj = mt['res'], mt['ci'], mt['cj']
            if mt['has_rgb']:
                wr = in_refs[widx][...]; widx += 1
                br = biases[:ci, bcol:bcol + 1]; bcol += 1
                y = _lrelu_agc(jnp.dot(wr, img, preferred_element_type=jnp.float32) + br)
                x = y if x is None else x + y
            # conv0: 3x3, stride 1, 'same' (this is the block's feature output).
            w0 = in_refs[widx][...]; widx += 1
            b0 = biases[:ci, bcol:bcol + 1]; bcol += 1
            feat = _lrelu_agc(
                _conv2d(x, w0, ks=3, pad=1, H=res, W=res, roll_hi=roll_hi) + b0)
            out_refs[1 + bi][...] = (feat if feat.shape[1] == mt['Mreal']
                                     else feat[:, :mt['Mreal']])
            # conv1: blur([1,3,3,1]) + stride-2 3x3 conv folded into one 6x6 conv,
            # evaluated densely then subsampled with an in-kernel 0/1 bf16 matmul.
            w1 = in_refs[widx][...]; widx += 1
            b1 = biases[:cj, bcol:bcol + 1]; bcol += 1
            full = _conv2d(feat, w1, ks=6, pad=2, H=res, W=res, roll_hi=roll_hi)
            sel = _down_select_mat(B, res, res, full.shape[1], mt['Mp_next'])
            x = _lrelu_agc(jnp.dot(full.astype(jnp.bfloat16), sel,
                                   preferred_element_type=jnp.float32) + b1)
        # b4 epilogue: 3x3 conv, then fc == 4x4 'valid' conv gathered at (h, w) = (0, 0).
        wc = in_refs[widx][...]; widx += 1
        bc = biases[:c4, bcol:bcol + 1]; bcol += 1
        feat4 = _lrelu_agc(
            _conv2d(x, wc, ks=3, pad=1, H=4, W=4, roll_hi=roll_hi) + bc)
        out_refs[-1][...] = (feat4 if feat4.shape[1] == M4_real else feat4[:, :M4_real])
        wf = in_refs[widx][...]; widx += 1
        bf_ = biases[:oc, bcol:bcol + 1]; bcol += 1
        stack4 = _tap_stack(feat4, ks=4, pad=0, H=4, W=4, apply_mask=False, roll_hi=roll_hi)
        gathered = jnp.dot(stack4.astype(jnp.bfloat16),
                           _fc_select_mat(B, stack4.shape[1]),
                           preferred_element_type=jnp.float32)        # (16*c4, B)
        xo = jnp.dot(wf, gathered.astype(jnp.bfloat16),
                     preferred_element_type=jnp.float32)              # (oc, B)
        out_refs[0][...] = _lrelu_agc(xo + bf_)
        # TODO(synk): nn.Dropout(p=0.5) applied as eval-mode identity (no RNG mask);
        # mapping / cmap path disabled in this config (c_dim=None), as in the reference.

    vmem = pl.BlockSpec(memory_space=pltpu.MemorySpace.VMEM)
    outs = pl.pallas_call(
        kernel,
        out_shape=tuple(out_shapes),
        in_specs=[vmem] * n_in,
        out_specs=tuple(vmem for _ in out_shapes),
    )(*inputs)

    x_out = jnp.transpose(outs[0])                                    # (B, oc_n)
    feats = {}
    for bi, mt in enumerate(meta):
        res, ci = mt['res'], mt['ci']
        feats[res] = jnp.transpose(outs[1 + bi].reshape(ci, B, res, res), (1, 0, 2, 3))
    feats[4] = jnp.transpose(outs[-1].reshape(c4, B, 4, 4), (1, 0, 2, 3))
    return x_out, feats


# --------------------- pure-JAX reference (for checking) ------------------- #
def reference_forward(raw, img_nchw):
    """f32 reference following the original module (separate blur + stride-2 conv)."""
    f1 = np.asarray(raw['resample_filter'], np.float32)
    f2d = np.outer(f1, f1)
    f2d = f2d / f2d.sum()

    def conv(x, w, stride, pad):
        return jax.lax.conv_general_dilated(
            x, w, window_strides=(stride, stride),
            padding=[(pad, pad), (pad, pad)],
            dimension_numbers=('NCHW', 'OIHW', 'NCHW'))

    def blur(x):
        C = x.shape[1]
        f = jnp.asarray(np.tile(f2d[None, None], (C, 1, 1, 1)), jnp.float32)
        return jax.lax.conv_general_dilated(
            x, f, window_strides=(1, 1), padding=[(2, 2), (2, 2)],
            dimension_numbers=('NCHW', 'OIHW', 'NCHW'), feature_group_count=C)

    def cb(b):
        return b.reshape(1, -1, 1, 1)

    img = img_nchw.astype(jnp.float32)
    x = None
    feats = {}
    for blk in raw['blocks']:
        if 'fromrgb_w' in blk:
            y = _lrelu_agc(conv(img, blk['fromrgb_w'], 1, 0) + cb(blk['fromrgb_b']))
            x = y if x is None else x + y
        feat = _lrelu_agc(conv(x, blk['conv0_w'], 1, 1) + cb(blk['conv0_b']))
        x = _lrelu_agc(conv(blur(feat), blk['conv1_w'], 2, 0) + cb(blk['conv1_b']))
        feats[blk['res']] = feat
    b4 = raw['b4']
    feat = _lrelu_agc(conv(x, b4['conv_w'], 1, 1) + cb(b4['conv_b']))
    feats[4] = feat
    flat = feat.reshape(feat.shape[0], -1)
    xo = _lrelu_agc(flat @ b4['fc_w'].reshape(b4['fc_w'].shape[0], -1).T
                    + b4['fc_b'].reshape(1, -1))
    return xo, feats


if __name__ == "__main__":
    key = jax.random.PRNGKey(0)
    pkey, xkey = jax.random.split(key)
    resolution, ic_n, oc_n = 16, 4, 64
    params, raw = init_encoder_params(pkey, resolution=resolution, ic_n=ic_n, oc_n=oc_n,
                                      ch_base=128, ch_max=32)
    img = jax.random.normal(xkey, (2, ic_n, resolution, resolution), jnp.float32)

    x, feats = encoder_forward(params, img)
    jax.block_until_ready(x)
    for v in feats.values():
        jax.block_until_ready(v)

    assert x.shape == (2, oc_n)
    assert feats[16].shape == (2, 8, 16, 16)
    assert feats[8].shape == (2, 16, 8, 8)
    assert feats[4].shape == (2, 32, 4, 4)

    # Numerical check vs. pure-JAX f32 reference of the original blur+strided-conv
    # path (kernel uses bf16 matmul operands, so tolerances are loose but far below
    # the O(1) signal a structural / indexing error would produce).
    x_ref, feats_ref = reference_forward(raw, img)
    np.testing.assert_allclose(np.asarray(x), np.asarray(x_ref), rtol=0.15, atol=0.15)
    for r, fr in feats_ref.items():
        np.testing.assert_allclose(np.asarray(feats[r]), np.asarray(fr), rtol=0.15, atol=0.15)

    print("KERNEL_OK")
</pallas_src>

<mosaic_0001>
module attributes {stable_mosaic.version = 11 : i64} {
  func.func @k(%arg0: memref<8x128xf32, #tpu.memory_space<vmem>>, %arg1: memref<8x128xf32, #tpu.memory_space<vmem>>) attributes {dimension_semantics = [], scalar_prefetch = 0 : i64, scratch_operands = 0 : i64, tpu.core_type = #tpu.core_type<tc>} {
    %c0 = arith.constant 0 : index
    %c0_0 = arith.constant 0 : index
    %0 = vector.load %arg0[%c0, %c0_0] : memref<8x128xf32, #tpu.memory_space<vmem>>, vector<8x128xf32>
    %c1_i32 = arith.constant 1 : i32
    %1 = tpu.dynamic_rotate %0 by %c1_i32 dim 1 : vector<8x128xf32>, i32 -> vector<8x128xf32>
    %c0_1 = arith.constant 0 : index
    %c0_2 = arith.constant 0 : index
    %2 = vector.load %arg1[%c0_1, %c0_2] : memref<8x128xf32, #tpu.memory_space<vmem>>, vector<8x128xf32>
    tpu.vector_store %arg1[%c0_1, %c0_2], %1 {strides = array<i32>} : memref<8x128xf32, #tpu.memory_space<vmem>>, vector<8x128xf32>,
    return
  }
}

</mosaic_0001>

<bundles_post_ra>
// kernel: tpu_custom_call.1
= control target key start
LH: loop header
LB: loop body
LE: loop exit
PB: predicated region body
PF: predicated region fallthrough
CT: control target
= control target key end

     0   :  { %6 = vsyncpa [#allocation3], 0  ;;  %s106_s0 = inlined_call_operand.hbm [shape: f32[8,128], index: 0, kind: input, shape index: {}]   ;;  %s107_s1 = inlined_call_operand.hbm [shape: f32[8,128], index: 1, kind: output, shape index: {}]  }
   0x1   :  { %7 = vsyncpa [#allocation4], 0  ;;  %s87_s6 = smov [#allocation2]  }
   0x2   :  { %s14_s7 = sshll.u32 %s87_s6, 4  ;;  %s15_s7 = int_to_ptr.vmem [resolvable:$true] %s14_s7 }
   0x3   :  { %s51_s8 = scalar_lea.vmem %s15_s7, 128  ;;  %p56_p1 = scmp.lt.s32.totalorder %s15_s7, %s15_s7 }
   0x4   :  { %p52_p0 = scmp.ne.s32.totalorder %s15_s7, %s51_s8  ;;  %p57_p2 = scmp.lt.s32.totalorder %s51_s8, %s51_s8 }
   0x6   :  { %p58_p3 = por %p57_p2, %p56_p1 }
   0x8   :  { %p59_p4 = pnand %p58_p3, %p52_p0 }
   0xa   :  { %62 = shalt.err (!%p59_p4)
}
   0xb   :  { %17 = dma.hbm_to_vmem [thread:$0]  %s106_s0, 128, %s15_s7, [#allocation3]  }
   0xc   :  { %83 = dma.done.wait [#allocation3], 128  }
   0xd   :  { %84 = vsyncadd [#allocation3], 4294967168  ;;  %v21_v0 = vld [vmem:[#allocation2] sm:$0xff]  ;;  %s88_s11 = smov 1   ;;  %s89_s12 = smov [#allocation5]  }
   0xe   :  { %22 = vrot.lane.b32.xlu0 %v21_v0, %s88_s11  ;;  %s31_s13 = sshll.u32 %s89_s12, 4  ;;  %s32_s13 = int_to_ptr.vmem [resolvable:$true] %s31_s13 }
   0xf   :  { %s63_s14 = scalar_lea.vmem %s32_s13, 128  ;;  %p68_p6 = scmp.lt.s32.totalorder %s32_s13, %s32_s13 }
  0x10   :  { %p64_p5 = scmp.ne.s32.totalorder %s32_s13, %s63_s14  ;;  %p69_p7 = scmp.lt.s32.totalorder %s63_s14, %s63_s14 }
  0x12   :  { %p70_p8 = por %p69_p7, %p68_p6 }
  0x14   :  { %p71_p9 = pnand %p70_p8, %p64_p5 }
  0x80   :  { %v23_v1 = vpop.permute.xlu0 %22 }
  0x81   :  { %24 = vst [vmem:[#allocation5] sm:$0xff] %v23_v1 }
  0x82   :  { %74 = shalt.err (!%p71_p9)
}
  0x83   :  { %34 = dma.vmem_to_hbm [thread:$0]  %s32_s13, 128, %s107_s1, [#allocation4]  }
  0x84   :  { %85 = dma.done.wait [#allocation4], 128  }
  0x85   :  { %86 = vsyncadd [#allocation4], 4294967168 }
  0x86   :  { %38 = vsyncpa [#allocation3], 1 }
  0x87   :  { %39 = vsyncpa [#allocation4], 1 }

</bundles_post_ra>
